<compile_context>
chip_gen: v7x
topology: tpu7x:2x2x1
jax: 0.10.0
libtpu: 0.0.40
codegen_flags: <defaults>
</compile_context>

<pallas_src>
import jax
import jax.numpy as jnp
from jax.experimental import pallas as pl
from jax.experimental.pallas import tpu as pltpu


# ----------------------------------------------------------------------------- helpers
def _round_up(x, m):
    return ((x + m - 1) // m) * m


def _chip_traits():
    """(mxu_align, num_tensorcores, default block_m target) from the local device."""
    kind = ""
    try:
        kind = jax.devices()[0].device_kind.lower()
    except Exception:
        pass
    older = any(t in kind for t in ("v2", "v3", "v4", "v5"))   # 128-wide MXU parts
    mxu_align = 128 if older else 256
    is_v7 = ("v7" in kind) or ("7x" in kind) or ("tpu7" in kind)
    num_tc = 2 if is_v7 else 1
    target_bm = 256 if older else 512
    return mxu_align, num_tc, target_bm


def _vmem_cap_bytes():
    """Usable scoped-VMEM cap: physical per-core VMEM minus ~12 MiB headroom."""
    phys = None
    try:
        phys = int(pltpu.get_tpu_info().vmem_capacity_bytes)
    except Exception:
        phys = None
    if not phys or phys <= 0:
        phys = 64 << 20          # conservative: v7x per-TensorCore VMEM
    return int(max(24 << 20, min(phys - (12 << 20), 100 << 20)))


def _vmem_est_resident(bm, bb, pv, dp, x_isz, w_isz, out_isz, weight_buffers):
    weights = (bb * pv + pv * dp) * w_isz * weight_buffers
    biases = (pv + dp) * 4 * weight_buffers
    io = 2 * bm * (bb * x_isz + dp * out_isz)      # double-buffered x / out tiles
    inter = bm * (pv + dp) * 4                     # f32 intermediates
    return weights + biases + io + inter


def _vmem_est_ktiled(bm, tk, pv, dp, x_isz, w_isz, out_isz):
    xw1 = 2 * bm * tk * x_isz + 2 * tk * pv * w_isz      # double-buffered x / W1 tiles
    w2b = 2 * (pv * dp * w_isz + (pv + dp) * 4)          # resident W2 + biases
    out = 2 * bm * dp * out_isz
    scratch = bm * pv * 4 + bm * dp * 4                   # h accumulator + y temp
    return xw1 + w2b + out + scratch


def _choose_block_m(n, sub_mult, mxu_align, num_tc, target_bm, requested=None):
    n_pad = _round_up(max(n, 1), sub_mult)
    if requested is not None:
        return max(sub_mult, min(_round_up(requested, sub_mult), n_pad))
    bm = min(target_bm, n_pad)
    if bm >= mxu_align:
        bm = (bm // mxu_align) * mxu_align
    else:
        bm = _round_up(bm, sub_mult)
    # v7x: make sure both TensorCores get at least one M tile.
    if num_tc > 1 and n_pad >= num_tc * 128:
        per_core = max(128, _round_up(pl.cdiv(n_pad, num_tc), sub_mult))
        bm = min(bm, per_core)
    return max(sub_mult, bm)


def _choose_tk(bb_dim_p, bm, pv, dp, x_isz, w_isz, out_isz, cap, requested=None):
    cands = [t for t in range(128, bb_dim_p + 1, 128) if bb_dim_p % t == 0]
    if requested is not None:
        req = max(128, _round_up(requested, 128))
        filtered = [t for t in cands if t <= req]
        cands = filtered if filtered else [min(cands)]
    for t in sorted(cands, reverse=True):
        if _vmem_est_ktiled(bm, t, pv, dp, x_isz, w_isz, out_isz) <= cap:
            return t
    return min(cands)


def _const_spec(shape, single_buffer):
    """BlockSpec for a grid-invariant operand (weights / biases)."""
    index_map = lambda *_: (0,) * len(shape)
    if single_buffer:
        return pl.BlockSpec(shape, index_map, pipeline_mode=pl.Buffered(1))
    return pl.BlockSpec(shape, index_map)


# ----------------------------------------------------------------------------- kernels
def _make_resident_kernel(sub_chunks, sub_m, cast_dtype):
    """Weights fully resident in VMEM; M tile split into sub-chunks so the MXU work of
    chunk c+1 overlaps the VPU bias/ReLU/downcast epilogue of chunk c."""

    def kernel(x_ref, w1_ref, b1_ref, w2_ref, b2_ref, o_ref):
        w1 = w1_ref[...]
        w2 = w2_ref[...]
        b1 = b1_ref[...]          # f32 (pre-cast on host)
        b2 = b2_ref[...]          # f32 (pre-cast on host)
        for c in range(sub_chunks):
            r0 = c * sub_m
            xs = x_ref[pl.ds(r0, sub_m), :]
            if cast_dtype is not None:
                xs = xs.astype(cast_dtype)
            h = jnp.dot(xs, w1, preferred_element_type=jnp.float32)
            h = jnp.maximum(h + b1, 0.0)
            if cast_dtype is not None:
                h = h.astype(cast_dtype)
            y = jnp.dot(h, w2, preferred_element_type=jnp.float32)
            o_ref[pl.ds(r0, sub_m), :] = (y + b2).astype(o_ref.dtype)

    return kernel


def _make_ktiled_kernel(cast_dtype):
    """Fallback when W1 does not fit VMEM: grid axis over bb_dim (K), f32 accumulator
    scratch for the hidden activation, epilogue + second matmul on the last K step."""

    def kernel(x_ref, w1_ref, b1_ref, w2_ref, b2_ref, o_ref, h_acc):
        k = pl.program_id(1)

        @pl.when(k == 0)
        def _init():
            h_acc[...] = jnp.zeros_like(h_acc)

        xs = x_ref[...]
        if cast_dtype is not None:
            xs = xs.astype(cast_dtype)
        h_acc[...] += jnp.dot(xs, w1_ref[...], preferred_element_type=jnp.float32)

        @pl.when(k == pl.num_programs(1) - 1)
        def _finish():
            h = jnp.maximum(h_acc[...] + b1_ref[...], 0.0)
            if cast_dtype is not None:
                h = h.astype(w2_ref.dtype)
            y = jnp.dot(h, w2_ref[...], preferred_element_type=jnp.float32)
            o_ref[...] = (y + b2_ref[...]).astype(o_ref.dtype)

    return kernel


# ----------------------------------------------------------------------------- params
def prepare_projector_params(w1_t, b1, w2_t, b2, *, param_dtype=None):
    """One-time setup (hoisted out of the forward): pad feature dims to lane-dense
    multiples of 128, pre-cast biases to f32, optionally cast weights (e.g. bf16)."""
    bb_dim, prev_dim = w1_t.shape
    dim = w2_t.shape[1]
    bb_dim_p = _round_up(bb_dim, 128)
    dim_p = _round_up(max(dim, 128), 128)

    b1 = jnp.asarray(b1, jnp.float32).reshape(1, -1)
    b2 = jnp.asarray(b2, jnp.float32).reshape(1, -1)
    if dim_p != dim:
        w2_t = jnp.pad(w2_t, ((0, 0), (0, dim_p - dim)))
        b2 = jnp.pad(b2, ((0, 0), (0, dim_p - dim)))
    if bb_dim_p != bb_dim:
        w1_t = jnp.pad(w1_t, ((0, bb_dim_p - bb_dim), (0, 0)))
    if param_dtype is not None:
        w1_t = w1_t.astype(param_dtype)
        w2_t = w2_t.astype(param_dtype)
    return dict(w1_t=w1_t, b1=b1, w2_t=w2_t, b2=b2,
                dim=int(dim), bb_dim=int(bb_dim))


# ----------------------------------------------------------------------------- builder
def build_projector_forward(params, n, x_dtype, *, out_dtype=None, block_m=None,
                            force_ktiled=False, k_tile=None,
                            matmul_in_param_dtype=True):
    """Returns a jitted fn(x, w1_t, b1, w2_t, b2) -> [n, dim] for fixed shapes."""
    w1_t, b1, w2_t, b2 = params["w1_t"], params["b1"], params["w2_t"], params["b2"]
    bb_dim, dim = params["bb_dim"], params["dim"]
    bb_dim_p, prev_dim = w1_t.shape
    dim_p = w2_t.shape[1]

    x_dtype = jnp.dtype(x_dtype)
    out_dtype = jnp.dtype(x_dtype if out_dtype is None else out_dtype)
    w_dtype = jnp.dtype(w1_t.dtype)
    x_isz, w_isz, out_isz = x_dtype.itemsize, w_dtype.itemsize, out_dtype.itemsize
    cast_dtype = w_dtype if matmul_in_param_dtype else None

    mxu_align, num_tc, target_bm = _chip_traits()
    cap = _vmem_cap_bytes()
    sub_mult = max(8, 32 // max(1, x_isz))           # bf16 packs 16 sublanes / vreg

    bm = _choose_block_m(n, sub_mult, mxu_align, num_tc, target_bm, block_m)

    # Decide between resident-weight path and K-tiled fallback.
    bm_res = bm
    if block_m is None:
        while bm_res > mxu_align and _vmem_est_resident(
                bm_res, bb_dim_p, prev_dim, dim_p, x_isz, w_isz, out_isz, 1) > cap:
            bm_res -= mxu_align
    resident_fits = _vmem_est_resident(
        bm_res, bb_dim_p, prev_dim, dim_p, x_isz, w_isz, out_isz, 1) <= cap
    use_ktiled = force_ktiled or not resident_fits
    if not use_ktiled:
        bm = bm_res

    flops = 2 * n * (bb_dim_p * prev_dim + prev_dim * dim_p)
    bytes_accessed = (n * bb_dim_p * x_isz
                      + (bb_dim_p * prev_dim + prev_dim * dim_p) * w_isz
                      + (prev_dim + dim_p) * 4
                      + n * dim_p * out_isz)
    cost = pl.CostEstimate(flops=int(flops), transcendentals=0,
                           bytes_accessed=int(bytes_accessed))

    def make_resident(single_buffer):
        wb = 1 if single_buffer else 2
        est = _vmem_est_resident(bm, bb_dim_p, prev_dim, dim_p,
                                 x_isz, w_isz, out_isz, wb)
        vmem_limit = int(min(cap, max(est + (8 << 20), 16 << 20)))
        sub_chunks = 2 if (bm >= 128 and bm % (2 * sub_mult) == 0) else 1
        kernel = _make_resident_kernel(sub_chunks, bm // sub_chunks, cast_dtype)
        return pl.pallas_call(
            kernel,
            out_shape=jax.ShapeDtypeStruct((n, dim_p), out_dtype),
            grid_spec=pltpu.PrefetchScalarGridSpec(
                num_scalar_prefetch=0,
                grid=(pl.cdiv(n, bm),),
                in_specs=[
                    pl.BlockSpec((bm, bb_dim_p), lambda i: (i, 0)),        # x tile
                    _const_spec((bb_dim_p, prev_dim), single_buffer),      # W1^T
                    _const_spec((1, prev_dim), single_buffer),             # b1 (f32)
                    _const_spec((prev_dim, dim_p), single_buffer),         # W2^T
                    _const_spec((1, dim_p), single_buffer),                # b2 (f32)
                ],
                out_specs=pl.BlockSpec((bm, dim_p), lambda i: (i, 0)),
            ),
            compiler_params=pltpu.CompilerParams(
                dimension_semantics=("parallel",),
                vmem_limit_bytes=vmem_limit),
            cost_estimate=cost,
        )

    def make_ktiled():
        tk = _choose_tk(bb_dim_p, bm, prev_dim, dim_p,
                        x_isz, w_isz, out_isz, cap, k_tile)
        est = _vmem_est_ktiled(bm, tk, prev_dim, dim_p, x_isz, w_isz, out_isz)
        vmem_limit = int(min(cap, max(est + (8 << 20), 16 << 20)))
        kernel = _make_ktiled_kernel(cast_dtype)
        return pl.pallas_call(
            kernel,
            out_shape=jax.ShapeDtypeStruct((n, dim_p), out_dtype),
            grid_spec=pltpu.PrefetchScalarGridSpec(
                num_scalar_prefetch=0,
                grid=(pl.cdiv(n, bm), bb_dim_p // tk),
                in_specs=[
                    pl.BlockSpec((bm, tk), lambda i, k: (i, k)),            # x tile
                    pl.BlockSpec((tk, prev_dim), lambda i, k: (k, 0)),      # W1^T K-tile
                    pl.BlockSpec((1, prev_dim), lambda i, k: (0, 0)),       # b1 (f32)
                    pl.BlockSpec((prev_dim, dim_p), lambda i, k: (0, 0)),   # W2^T
                    pl.BlockSpec((1, dim_p), lambda i, k: (0, 0)),          # b2 (f32)
                ],
                out_specs=pl.BlockSpec((bm, dim_p), lambda i, k: (i, 0)),
                scratch_shapes=[pltpu.VMEM((bm, prev_dim), jnp.float32)],
            ),
            compiler_params=pltpu.CompilerParams(
                dimension_semantics=("parallel", "arbitrary"),
                vmem_limit_bytes=vmem_limit),
            cost_estimate=cost,
        )

    col_pad = bb_dim_p - bb_dim

    def _wrap(call_):
        def fwd(x, w1, b1_, w2, b2_):
            if col_pad:
                x = jnp.pad(x, ((0, 0), (0, col_pad)))
            out = call_(x, w1, b1_, w2, b2_)
            return out[:, :dim] if dim_p != dim else out
        return fwd

    if use_ktiled:
        return jax.jit(_wrap(make_ktiled()))

    # Resident path: try single-buffered (pl.Buffered(1)) weights; verify once at build
    # time with an AOT probe compile.  Only this attempt is guarded — the fallback is
    # left unguarded so genuine errors (OOM, kernel bugs) surface with a normal stack.
    arg_specs = (jax.ShapeDtypeStruct((n, bb_dim), x_dtype),
                 jax.ShapeDtypeStruct(w1_t.shape, w1_t.dtype),
                 jax.ShapeDtypeStruct(b1.shape, b1.dtype),
                 jax.ShapeDtypeStruct(w2_t.shape, w2_t.dtype),
                 jax.ShapeDtypeStruct(b2.shape, b2.dtype))
    fwd_sb = jax.jit(_wrap(make_resident(single_buffer=True)))
    try:
        fwd_sb.lower(*arg_specs).compile()
        return fwd_sb
    except Exception:
        pass  # Buffered(1) rejected by this backend -> use default pipelining.

    if _vmem_est_resident(bm, bb_dim_p, prev_dim, dim_p,
                          x_isz, w_isz, out_isz, 2) <= cap:
        return jax.jit(_wrap(make_resident(single_buffer=False)))
    return jax.jit(_wrap(make_ktiled()))


# ----------------------------------------------------------------------------- init
def init_projector_params(key, bb_dim, prev_dim, dim, dtype=jnp.float32):
    """Deterministic init mimicking nn.Linear's kaiming-uniform-ish bounds.
    PyTorch stores Linear weight as [out, in]; we keep the transpose [in, out]."""
    k1, k2, k3, k4 = jax.random.split(key, 4)
    bound1 = 1.0 / (bb_dim ** 0.5)
    bound2 = 1.0 / (prev_dim ** 0.5)
    w1_t = jax.random.uniform(k1, (bb_dim, prev_dim), dtype, -bound1, bound1)
    b1 = jax.random.uniform(k2, (prev_dim,), dtype, -bound1, bound1)
    w2_t = jax.random.uniform(k3, (prev_dim, dim), dtype, -bound2, bound2)
    b2 = jax.random.uniform(k4, (dim,), dtype, -bound2, bound2)
    return w1_t, b1, w2_t, b2


# ----------------------------------------------------------------------------- demo
if __name__ == "__main__":
    key = jax.random.PRNGKey(0)
    kx1, kp1, kx2, kp2 = jax.random.split(key, 4)

    # ---- Test 1: resident-weight fused path (SimCLR projector, MXU-friendly dims).
    N, BB_DIM, PREV_DIM, DIM = 256, 128, 256, 128
    x = jax.random.normal(kx1, (N, BB_DIM), jnp.float32)
    w1_t, b1, w2_t, b2 = init_projector_params(kp1, BB_DIM, PREV_DIM, DIM)

    params = prepare_projector_params(w1_t, b1, w2_t, b2, param_dtype=jnp.bfloat16)
    fwd = build_projector_forward(params, N, jnp.bfloat16, out_dtype=jnp.float32)
    out = fwd(x.astype(jnp.bfloat16),
              params["w1_t"], params["b1"], params["w2_t"], params["b2"])
    out = jax.block_until_ready(out)

    ref = jnp.maximum(x @ w1_t + b1, 0.0) @ w2_t + b2
    assert out.shape == (N, DIM)
    err1 = float(jnp.max(jnp.abs(out - ref)))
    assert jnp.allclose(out, ref, atol=5e-2, rtol=5e-2), err1

    # ---- Test 2: K-tiled fallback path (bb_dim tiled over the grid, partial M block,
    #      padded backbone/projection dims) to verify the large-weight fallback.
    N2, BB2, PREV2, DIM2 = 200, 320, 256, 192
    x2 = jax.random.normal(kx2, (N2, BB2), jnp.float32)
    w1b, b1b, w2b, b2b = init_projector_params(kp2, BB2, PREV2, DIM2)

    params2 = prepare_projector_params(w1b, b1b, w2b, b2b, param_dtype=jnp.bfloat16)
    fwd_kt = build_projector_forward(params2, N2, jnp.bfloat16, out_dtype=jnp.float32,
                                     force_ktiled=True, k_tile=128, block_m=128)
    out2 = fwd_kt(x2.astype(jnp.bfloat16),
                  params2["w1_t"], params2["b1"], params2["w2_t"], params2["b2"])
    out2 = jax.block_until_ready(out2)

    ref2 = jnp.maximum(x2 @ w1b + b1b, 0.0) @ w2b + b2b
    assert out2.shape == (N2, DIM2)
    err2 = float(jnp.max(jnp.abs(out2 - ref2)))
    assert jnp.allclose(out2, ref2, atol=5e-2, rtol=5e-2), err2

    # TODO(synk): 'byol'/'NNCLR'/'TS-TCC' variants use BatchNorm1d (batch-statistics
    # reduction) — only the 'SimCLR' branch is implemented here.
    print("KERNEL_OK")
</pallas_src>

<mosaic_0001>
module attributes {stable_mosaic.version = 11 : i64} {
  func.func @kernel(%arg0: i32, %arg1: memref<256x128xbf16, #tpu.memory_space<vmem>>, %arg2: memref<128x256xbf16, #tpu.memory_space<vmem>>, %arg3: memref<1x256xf32, #tpu.memory_space<vmem>>, %arg4: memref<256x128xbf16, #tpu.memory_space<vmem>>, %arg5: memref<1x128xf32, #tpu.memory_space<vmem>>, %arg6: memref<256x128xf32, #tpu.memory_space<vmem>>) attributes {dimension_semantics = [#tpu.dimension_semantics<parallel>], iteration_bounds = array<i64: 1>, scalar_prefetch = 0 : i64, scratch_operands = 0 : i64, tpu.core_type = #tpu.core_type<tc>, window_params = [{transform_indices = @transform_0, window_bounds = array<i64: 256, 128>}, {pipeline_mode = #tpu.pipeline_mode<synchronous>, transform_indices = @transform_1, window_bounds = array<i64: 128, 256>}, {pipeline_mode = #tpu.pipeline_mode<synchronous>, transform_indices = @transform_2, window_bounds = array<i64: 1, 256>}, {pipeline_mode = #tpu.pipeline_mode<synchronous>, transform_indices = @transform_3, window_bounds = array<i64: 256, 128>}, {pipeline_mode = #tpu.pipeline_mode<synchronous>, transform_indices = @transform_4, window_bounds = array<i64: 1, 128>}, {transform_indices = @transform_5, window_bounds = array<i64: 256, 128>}]} {
    %c0 = arith.constant 0 : index
    %c0_0 = arith.constant 0 : index
    %0 = vector.load %arg2[%c0, %c0_0] : memref<128x256xbf16, #tpu.memory_space<vmem>>, vector<128x256xbf16>
    %c0_1 = arith.constant 0 : index
    %c0_2 = arith.constant 0 : index
    %1 = vector.load %arg4[%c0_1, %c0_2] : memref<256x128xbf16, #tpu.memory_space<vmem>>, vector<256x128xbf16>
    %c0_3 = arith.constant 0 : index
    %c0_4 = arith.constant 0 : index
    %2 = vector.load %arg3[%c0_3, %c0_4] : memref<1x256xf32, #tpu.memory_space<vmem>>, vector<1x256xf32>
    %c0_5 = arith.constant 0 : index
    %c0_6 = arith.constant 0 : index
    %3 = vector.load %arg5[%c0_5, %c0_6] : memref<1x128xf32, #tpu.memory_space<vmem>>, vector<1x128xf32>
    %c0_7 = arith.constant 0 : index
    %c0_8 = arith.constant 0 : index
    %4 = vector.load %arg1[%c0_7, %c0_8] : memref<256x128xbf16, #tpu.memory_space<vmem>>, vector<128x128xbf16>
    %cst = arith.constant dense<0.000000e+00> : vector<128x256xf32>
    %5 = tpu.matmul %4, %0, %cst {dimension_numbers = #tpu.dot_dimension_numbers<[1], [0], [0], [1], [0, 0, 1, 1], [], []>} : vector<128x128xbf16>, vector<128x256xbf16>, vector<128x256xf32> -> vector<128x256xf32>
    %6 = vector.broadcast %2 : vector<1x256xf32> to vector<128x256xf32>
    %7 = arith.addf %5, %6 : vector<128x256xf32>
    %cst_9 = arith.constant 0.000000e+00 : f32
    %8 = vector.broadcast %cst_9 : f32 to vector<128x256xf32>
    %9 = arith.maximumf %7, %8 : vector<128x256xf32>
    %10 = arith.truncf %9 : vector<128x256xf32> to vector<128x256xbf16>
    %cst_10 = arith.constant dense<0.000000e+00> : vector<128x128xf32>
    %11 = tpu.matmul %10, %1, %cst_10 {dimension_numbers = #tpu.dot_dimension_numbers<[1], [0], [0], [1], [0, 0, 1, 1], [], []>} : vector<128x256xbf16>, vector<256x128xbf16>, vector<128x128xf32> -> vector<128x128xf32>
    %12 = vector.broadcast %3 : vector<1x128xf32> to vector<128x128xf32>
    %13 = arith.addf %11, %12 : vector<128x128xf32>
    %c0_11 = arith.constant 0 : index
    %c0_12 = arith.constant 0 : index
    %14 = vector.load %arg6[%c0_11, %c0_12] : memref<256x128xf32, #tpu.memory_space<vmem>>, vector<128x128xf32>
    tpu.vector_store %arg6[%c0_11, %c0_12], %13 {strides = array<i32>} : memref<256x128xf32, #tpu.memory_space<vmem>>, vector<128x128xf32>,
    %c128 = arith.constant 128 : index
    %c0_13 = arith.constant 0 : index
    %15 = vector.load %arg1[%c128, %c0_13] : memref<256x128xbf16, #tpu.memory_space<vmem>>, vector<128x128xbf16>
    %cst_14 = arith.constant dense<0.000000e+00> : vector<128x256xf32>
    %16 = tpu.matmul %15, %0, %cst_14 {dimension_numbers = #tpu.dot_dimension_numbers<[1], [0], [0], [1], [0, 0, 1, 1], [], []>} : vector<128x128xbf16>, vector<128x256xbf16>, vector<128x256xf32> -> vector<128x256xf32>
    %17 = vector.broadcast %2 : vector<1x256xf32> to vector<128x256xf32>
    %18 = arith.addf %16, %17 : vector<128x256xf32>
    %cst_15 = arith.constant 0.000000e+00 : f32
    %19 = vector.broadcast %cst_15 : f32 to vector<128x256xf32>
    %20 = arith.maximumf %18, %19 : vector<128x256xf32>
    %21 = arith.truncf %20 : vector<128x256xf32> to vector<128x256xbf16>
    %cst_16 = arith.constant dense<0.000000e+00> : vector<128x128xf32>
    %22 = tpu.matmul %21, %1, %cst_16 {dimension_numbers = #tpu.dot_dimension_numbers<[1], [0], [0], [1], [0, 0, 1, 1], [], []>} : vector<128x256xbf16>, vector<256x128xbf16>, vector<128x128xf32> -> vector<128x128xf32>
    %23 = vector.broadcast %3 : vector<1x128xf32> to vector<128x128xf32>
    %24 = arith.addf %22, %23 : vector<128x128xf32>
    %c128_17 = arith.constant 128 : index
    %c0_18 = arith.constant 0 : index
    %25 = vector.load %arg6[%c128_17, %c0_18] : memref<256x128xf32, #tpu.memory_space<vmem>>, vector<128x128xf32>
    tpu.vector_store %arg6[%c128_17, %c0_18], %24 {strides = array<i32>} : memref<256x128xf32, #tpu.memory_space<vmem>>, vector<128x128xf32>,
    return
  }
  func.func @transform_0(%arg0: i32) -> (i32, i32) {
    %c0_i32 = arith.constant 0 : i32
    %c0_i32_0 = arith.constant 0 : i32
    return %arg0, %c0_i32 : i32, i32
  }
  func.func @transform_1(%arg0: i32) -> (i32, i32) {
    %c0_i32 = arith.constant 0 : i32
    %c0_i32_0 = arith.constant 0 : i32
    %c0_i32_1 = arith.constant 0 : i32
    return %c0_i32, %c0_i32_0 : i32, i32
  }
  func.func @transform_2(%arg0: i32) -> (i32, i32) {
    %c0_i32 = arith.constant 0 : i32
    %c0_i32_0 = arith.constant 0 : i32
    %c0_i32_1 = arith.constant 0 : i32
    return %c0_i32, %c0_i32_0 : i32, i32
  }
  func.func @transform_3(%arg0: i32) -> (i32, i32) {
    %c0_i32 = arith.constant 0 : i32
    %c0_i32_0 = arith.constant 0 : i32
    %c0_i32_1 = arith.constant 0 : i32
    return %c0_i32, %c0_i32_0 : i32, i32
  }
  func.func @transform_4(%arg0: i32) -> (i32, i32) {
    %c0_i32 = arith.constant 0 : i32
    %c0_i32_0 = arith.constant 0 : i32
    %c0_i32_1 = arith.constant 0 : i32
    return %c0_i32, %c0_i32_0 : i32, i32
  }
  func.func @transform_5(%arg0: i32) -> (i32, i32) {
    %c0_i32 = arith.constant 0 : i32
    %c0_i32_0 = arith.constant 0 : i32
    return %arg0, %c0_i32 : i32, i32
  }
}

</mosaic_0001>

<bundles_post_ra>
// kernel: fwd.1
= control target key start
LH: loop header
LB: loop body
LE: loop exit
PB: predicated region body
PF: predicated region fallthrough
CT: control target
= control target key end

     0   :  { %10 = vsyncpa [#allocation3], 0  ;;  %s1617_s0 = inlined_call_operand.hbm [shape: bf16[256,128], index: 0, kind: input, shape index: {}]   ;;  %s1618_s1 = inlined_call_operand.hbm [shape: bf16[128,256], index: 1, kind: input, shape index: {}]   ;;  %s1619_s2 = inlined_call_operand.vmem [shape: f32[1,256], index: 2, kind: input, shape index: {}]   ;;  %s1620_s3 = inlined_call_operand.hbm [shape: bf16[256,128], index: 3, kind: input, shape index: {}]   ;;  %s1621_s4 = inlined_call_operand.vmem [shape: f32[1,128], index: 4, kind: input, shape index: {}]   ;;  %s1622_s5 = inlined_call_operand.hbm [shape: f32[256,128], index: 5, kind: output, shape index: {}]  }
   0x1   :  { %11 = vsyncpa [#allocation6], 0 }
   0x2   :  { %12 = vsyncpa [#allocation4], 0  ;;  %s1336_s18 = smov [#allocation5]   ;;  %s1242_s22 = scalar_lea.hbm %s1618_s1, 2048 }
   0x3   :  { %s30_s19 = sshll.u32 %s1336_s18, 4  ;;  %p1243_p0 = scmp.ne.s32.totalorder %s1618_s1, %s1242_s22  ;;  %s31_s19 = int_to_ptr.vmem [resolvable:$true] %s30_s19 }
   0x4   :  { %p1246_p1 = scmp.lt.u32.totalorder %s1242_s22, %s1618_s1 }
   0x6   :  { %p1248_p2 = pnand %p1246_p1, %p1243_p0 }
   0x8   :  { %1251 = shalt.err (!%p1248_p2)
}
   0x9   :  { %s1252_s27 = scalar_lea.vmem %s31_s19, 2048  ;;  %p1257_p4 = scmp.lt.s32.totalorder %s31_s19, %s31_s19 }
   0xa   :  { %p1253_p3 = scmp.ne.s32.totalorder %s31_s19, %s1252_s27  ;;  %p1258_p5 = scmp.lt.s32.totalorder %s1252_s27, %s1252_s27 }
   0xc   :  { %p1259_p6 = por %p1258_p5, %p1257_p4 }
   0xe   :  { %p1260_p7 = pnand %p1259_p6, %p1253_p3 }
  0x10   :  { %1263 = shalt.err (!%p1260_p7)
}
  0x11   :  { %s1337_s28 = smov 128   ;;  %s1338_s29 = smov 8  }
  0x12   :  { %36 = dma.hbm_to_vmem [thread:$0]  %s1618_s1, 2048, %s31_s19, [#allocation6], %s1337_s28, %s1337_s28, %s1338_s29  }
  0x13   :  { %s1339_s7 = smov [#allocation2]   ;;  %s1264_s11 = scalar_lea.hbm %s1617_s0, 2048 }
  0x14   :  { %s18_s8 = sshll.u32 %s1339_s7, 4  ;;  %p1265_p8 = scmp.ne.s32.totalorder %s1617_s0, %s1264_s11  ;;  %s19_s8 = int_to_ptr.vmem [resolvable:$true] %s18_s8 }
  0x15   :  { %p1268_p9 = scmp.lt.u32.totalorder %s1264_s11, %s1617_s0 }
  0x17   :  { %p1270_p10 = pnand %p1268_p9, %p1265_p8 }
  0x19   :  { %1273 = shalt.err (!%p1270_p10)
}
  0x1a   :  { %s1274_s16 = scalar_lea.vmem %s19_s8, 2048  ;;  %p1279_p12 = scmp.lt.s32.totalorder %s19_s8, %s19_s8 }
  0x1b   :  { %p1275_p11 = scmp.ne.s32.totalorder %s19_s8, %s1274_s16  ;;  %p1280_p13 = scmp.lt.s32.totalorder %s1274_s16, %s1274_s16 }
  0x1d   :  { %p1281_p0 = por %p1280_p13, %p1279_p12 }
  0x1f   :  { %p1282_p1 = pnand %p1281_p0, %p1275_p11 }
  0x21   :  { %1285 = shalt.err (!%p1282_p1)
}
  0x22   :  { %s1340_s1 = smov 64   ;;  %s1341_s17 = smov 4  }
  0x23   :  { %24 = dma.hbm_to_vmem [thread:$0]  %s1617_s0, 2048, %s19_s8, [#allocation3], %s1340_s1, %s1340_s1, %s1341_s17  }
  0x24   :  { %s1342_s20 = smov [#allocation7]   ;;  %s1286_s24 = scalar_lea.hbm %s1620_s3, 2048 }
  0x25   :  { %s44_s21 = sshll.u32 %s1342_s20, 4  ;;  %p1287_p2 = scmp.ne.s32.totalorder %s1620_s3, %s1286_s24  ;;  %s45_s21 = int_to_ptr.vmem [resolvable:$true] %s44_s21 }
  0x26   :  { %p1290_p3 = scmp.lt.u32.totalorder %s1286_s24, %s1620_s3 }
  0x28   :  { %p1292_p4 = pnand %p1290_p3, %p1287_p2 }
  0x2a   :  { %1295 = shalt.err (!%p1292_p4)
}
  0x2b   :  { %s1296_s6 = scalar_lea.vmem %s45_s21, 2048  ;;  %p1301_p6 = scmp.lt.s32.totalorder %s45_s21, %s45_s21 }
  0x2c   :  { %p1297_p5 = scmp.ne.s32.totalorder %s45_s21, %s1296_s6  ;;  %p1302_p7 = scmp.lt.s32.totalorder %s1296_s6, %s1296_s6 }
  0x2e   :  { %p1303_p8 = por %p1302_p7, %p1301_p6 }
  0x30   :  { %p1304_p9 = pnand %p1303_p8, %p1297_p5 }
  0x32   :  { %1307 = shalt.err (!%p1304_p9)
}
  0x33   :  { %50 = dma.hbm_to_vmem [thread:$0]  %s1620_s3, 2048, %s45_s21, [#allocation6], %s1340_s1, %s1340_s1, %s1341_s17  }
  0x34   :  { %1330 = dma.done.wait [#allocation3], 2048  }
  0x35   :  { %1331 = vsyncadd [#allocation3], 4294965248 }
  0x36   :  { %1332 = dma.done.wait [#allocation6], 4096  }
  0x37   :  { %1333 = vsyncadd [#allocation6], 4294963200  ;;  %v1343_v0 = vmov 0   ;;  %v1186_v1 = vld [vmem:[#allocation5 + $0x4] ss:$8 sps:$4 sm:$0xff]   ;;  %v1426_v22 = vld [vmem:[#allocation7 + $0x50] sm:$0xff]   ;;  %v130_v49 = vlaneseq }
  0x38   :  { %300 = vmatprep.mubr.bf16.mxu0 %v1343_v0  ;;  %v1188_v2 = vld [vmem:[#allocation5] ss:$8 sps:$4 sm:$0xff]   ;;  %268 = vmatprep.subr.bf16.mxu0 %v1186_v1  ;;  %v1189_v3 = vld [vmem:[#allocation5 + $0x14] ss:$8 sps:$4 sm:$0xff]   ;;  %v1191_v4 = vld [vmem:[#allocation5 + $0x10] ss:$8 sps:$4 sm:$0xff]  }
  0x39   :  { %269 = vmatpush1.bf16.msra.mxu0 %v1188_v2  ;;  %v1192_v5 = vld [vmem:[#allocation5 + $0x24] ss:$8 sps:$4 sm:$0xff]   ;;  %v1194_v6 = vld [vmem:[#allocation5 + $0x20] ss:$8 sps:$4 sm:$0xff]   ;;  %v1195_v7 = vld [vmem:[#allocation5 + $0x34] ss:$8 sps:$4 sm:$0xff]  }
  0x3a   :  { %270 = vmatprep.subr.bf16.mxu0 %v1189_v3  ;;  %v1197_v8 = vld [vmem:[#allocation5 + $0x30] ss:$8 sps:$4 sm:$0xff]   ;;  %v1198_v9 = vld [vmem:[#allocation5 + $0x44] ss:$8 sps:$4 sm:$0xff]   ;;  %v1200_v10 = vld [vmem:[#allocation5 + $0x40] ss:$8 sps:$4 sm:$0xff]  }
  0x3b   :  { %v1201_v11 = vld [vmem:[#allocation5 + $0x54] ss:$8 sps:$4 sm:$0xff]   ;;  %v1203_v12 = vld [vmem:[#allocation5 + $0x50] ss:$8 sps:$4 sm:$0xff]   ;;  %v1204_v13 = vld [vmem:[#allocation5 + $0x64] ss:$8 sps:$4 sm:$0xff]  }
  0x3c   :  { %v1206_v14 = vld [vmem:[#allocation5 + $0x60] ss:$8 sps:$4 sm:$0xff]   ;;  %v1207_v15 = vld [vmem:[#allocation5 + $0x74] ss:$8 sps:$4 sm:$0xff]   ;;  %v1209_v16 = vld [vmem:[#allocation5 + $0x70] ss:$8 sps:$4 sm:$0xff]  }
  0x3d   :  { %271 = vmatpush1.bf16.msra.mxu0 %v1191_v4  ;;  %v1415_v17 = vld [vmem:[#allocation7 + $0x40] sm:$0xff]   ;;  %v1420_v20 = vld [vmem:[#allocation7 + $0x48] sm:$0xff]   ;;  %v1429_v23 = vld [vmem:[#allocation7 + $0x10] sm:$0xff]   ;;  %v131_v50 = vshrl.u32 %v130_v49, 7 }
  0x3e   :  { %272 = vmatprep.subr.bf16.mxu0 %v1192_v5  ;;  %v1210_v18 = vld [vmem:[#allocation2] sm:$0xff]   ;;  %1049 = vmatprep.subr.bf16.mxu1 %v1415_v17  ;;  %v1423_v21 = vld [vmem:[#allocation7 + $0x8] sm:$0xff]   ;;  %v1432_v24 = vld [vmem:[#allocation7 + $0x58] sm:$0xff]  }
  0x3f   :  { %v1417_v19 = vld [vmem:[#allocation7] sm:$0xff]   ;;  %v1211_v25 = vld [vmem:[#allocation2 + $0x8] sm:$0xff]   ;;  %v1435_v26 = vld [vmem:[#allocation7 + $0x18] sm:$0xff]   ;;  %v132_v51 = vsub.s32 0, %v131_v50  ;;  %v136_v53 = vsub.s32 1, %v131_v50 }
  0x40   :  { %1050 = vmatpush3.bf16.msra.mxu1 %v1417_v19  ;;  %v1438_v27 = vld [vmem:[#allocation7 + $0x60] sm:$0xff]   ;;  %v1445_v29 = vld [vmem:[#allocation7 + $0x68] sm:$0xff]   ;;  %v1212_v30 = vld [vmem:[#allocation2 + $0x10] sm:$0xff]  }
  0x41   :  { %273 = vmatpush1.bf16.msra.mxu0 %v1194_v6  ;;  %1051 = vmatprep.subr.bf16.mxu1 %v1420_v20  ;;  %v1442_v28 = vld [vmem:[#allocation7 + $0x20] sm:$0xff]   ;;  %v1213_v31 = vld [vmem:[#allocation2 + $0x18] sm:$0xff]   ;;  %v1215_v33 = vld [vmem:[#allocation2 + $0x28] sm:$0xff]  }
  0x42   :  { %274 = vmatprep.subr.bf16.mxu0 %v1195_v7  ;;  %v1214_v32 = vld [vmem:[#allocation2 + $0x20] sm:$0xff]   ;;  %v1216_v34 = vld [vmem:[#allocation2 + $0x30] sm:$0xff]   ;;  %v1217_v35 = vld [vmem:[#allocation2 + $0x38] sm:$0xff]  }
  0x43   :  { %v1218_v36 = vld [vmem:[#allocation2 + $0x40] sm:$0xff]   ;;  %v1219_v37 = vld [vmem:[#allocation2 + $0x48] sm:$0xff]   ;;  %v1220_v38 = vld [vmem:[#allocation2 + $0x50] sm:$0xff]  }
  0x44   :  { %1052 = vmatpush3.bf16.msra.mxu1 %v1423_v21  ;;  %v1459_v39 = vld [vmem:[#allocation7 + $0x28] sm:$0xff]   ;;  %v1221_v40 = vld [vmem:[#allocation2 + $0x58] sm:$0xff]   ;;  %v1462_v41 = vld [vmem:[#allocation7 + $0x70] sm:$0xff]  }
  0x45   :  { %275 = vmatpush1.bf16.msra.mxu0 %v1197_v8  ;;  %1053 = vmatprep.subr.bf16.mxu1 %v1426_v22  ;;  %v1464_v42 = vld [vmem:[#allocation7 + $0x30] sm:$0xff]   ;;  %v1468_v43 = vld [vmem:[#allocation7 + $0x78] sm:$0xff]   ;;  %v1222_v45 = vld [vmem:[#allocation2 + $0x60] sm:$0xff]  }
  0x46   :  { %276 = vmatprep.subr.bf16.mxu0 %v1198_v9  ;;  %v1471_v44 = vld [vmem:[#allocation7 + $0x38] sm:$0xff]   ;;  %v1223_v46 = vld [vmem:[#allocation2 + $0x68] sm:$0xff]   ;;  %v1224_v47 = vld [vmem:[#allocation2 + $0x70] sm:$0xff]  }
  0x47   :  { %v1225_v48 = vld [vmem:[#allocation2 + $0x78] sm:$0xff]   ;;  %v111_v52 = vld [vmem:[%s1619_s2] sm:$0x3] }
  0x48   :  { %1054 = vmatpush3.bf16.msra.mxu1 %v1429_v23  ;;  %v1482_v54 = vrot.slane %v111_v52, %v132_v51  ;;  %v1484_v55 = vrot.slane %v111_v52, %v136_v53 }
  0x49   :  { %277 = vmatpush1.bf16.msra.mxu0 %v1200_v10  ;;  %1055 = vmatprep.subr.bf16.mxu1 %v1432_v24 }
  0x4a   :  { %278 = vmatprep.subr.bf16.mxu0 %v1201_v11 }
  0x4c   :  { %1056 = vmatpush3.bf16.msra.mxu1 %v1435_v26 }
  0x4d   :  { %279 = vmatpush1.bf16.msra.mxu0 %v1203_v12  ;;  %1057 = vmatprep.subr.bf16.mxu1 %v1438_v27 }
  0x4e   :  { %280 = vmatprep.subr.bf16.mxu0 %v1204_v13 }
  0x50   :  { %1058 = vmatpush3.bf16.msra.mxu1 %v1442_v28 }
  0x51   :  { %281 = vmatpush1.bf16.msra.mxu0 %v1206_v14  ;;  %1059 = vmatprep.subr.bf16.mxu1 %v1445_v29 }
  0x52   :  { %282 = vmatprep.subr.bf16.mxu0 %v1207_v15 }
  0x54   :  { %1060 = vmatpush3.bf16.msra.mxu1 %v1459_v39 }
  0x55   :  { %283 = vmatpush1.bf16.msra.mxu0 %v1209_v16  ;;  %1061 = vmatprep.subr.bf16.mxu1 %v1462_v41 }
  0x56   :  { %708 = vmatprep.subr.bf16.mxu0 %v1186_v1 }
  0x58   :  { %301 = vmatmul.mubr.bf16.vlgmr.msra.gmra.mrb[0].mxu0 %v1210_v18  ;;  %1062 = vmatpush3.bf16.msra.mxu1 %v1464_v42 }
  0x59   :  { %709 = vmatpush1.bf16.msra.mxu0 %v1188_v2  ;;  %310 = vmatprep.mubr.bf16.mxu0 %v1343_v0 }
  0x5a   :  { %710 = vmatprep.subr.bf16.mxu0 %v1189_v3  ;;  %1063 = vmatprep.subr.bf16.mxu1 %v1468_v43 }
  0x5c   :  { %1064 = vmatpush3.bf16.msra.mxu1 %v1471_v44 }
  0x5d   :  { %711 = vmatpush1.bf16.msra.mxu0 %v1191_v4  ;;  %1113 = vmatprep.subr.bf16.mxu1 %v1415_v17 }
  0x5e   :  { %712 = vmatprep.subr.bf16.mxu0 %v1192_v5 }
  0x60   :  { %311 = vmatmul.mubr.bf16.gmra.mrb[4].mxu0 %v1211_v25 }
  0x61   :  { %320 = vmatprep.mubr.bf16.mxu0 %v1343_v0  ;;  %713 = vmatpush1.bf16.msra.mxu0 %v1194_v6 }
  0x62   :  { %714 = vmatprep.subr.bf16.mxu0 %v1195_v7 }
  0x65   :  { %715 = vmatpush1.bf16.msra.mxu0 %v1197_v8 }
  0x66   :  { %716 = vmatprep.subr.bf16.mxu0 %v1198_v9 }
  0x68   :  { %321 = vmatmul.mubr.bf16.gmra.mrb[8].mxu0 %v1212_v30 }
  0x69   :  { %330 = vmatprep.mubr.bf16.mxu0 %v1343_v0  ;;  %717 = vmatpush1.bf16.msra.mxu0 %v1200_v10 }
  0x6a   :  { %718 = vmatprep.subr.bf16.mxu0 %v1201_v11 }
  0x6d   :  { %719 = vmatpush1.bf16.msra.mxu0 %v1203_v12 }
  0x6e   :  { %720 = vmatprep.subr.bf16.mxu0 %v1204_v13 }
  0x70   :  { %331 = vmatmul.mubr.bf16.gmra.mrb[12].mxu0 %v1213_v31 }
  0x71   :  { %340 = vmatprep.mubr.bf16.mxu0 %v1343_v0  ;;  %721 = vmatpush1.bf16.msra.mxu0 %v1206_v14 }
  0x72   :  { %722 = vmatprep.subr.bf16.mxu0 %v1207_v15 }
  0x75   :  { %723 = vmatpush1.bf16.msra.mxu0 %v1209_v16 }
  0x78   :  { %341 = vmatmul.mubr.bf16.gmra.mrb[16].mxu0 %v1214_v32 }
  0x79   :  { %350 = vmatprep.mubr.bf16.mxu0 %v1343_v0 }
  0x80   :  { %351 = vmatmul.mubr.bf16.gmra.mrb[20].mxu0 %v1215_v33 }
  0x81   :  { %360 = vmatprep.mubr.bf16.mxu0 %v1343_v0 }
  0x88   :  { %361 = vmatmul.mubr.bf16.gmra.mrb[24].mxu0 %v1216_v34 }
  0x89   :  { %370 = vmatprep.mubr.bf16.mxu0 %v1343_v0 }
  0x90   :  { %371 = vmatmul.mubr.bf16.gmra.mrb[28].mxu0 %v1217_v35 }
  0x91   :  { %740 = vmatprep.mubr.bf16.mxu0 %v1343_v0 }
  0x98   :  { %741 = vmatmul.mubr.bf16.vlgmr.msra.gmra.mrb[32].mxu0 %v1218_v36 }
  0x99   :  { %750 = vmatprep.mubr.bf16.mxu0 %v1343_v0 }
  0xa0   :  { %751 = vmatmul.mubr.bf16.gmra.mrb[36].mxu0 %v1219_v37 }
  0xa1   :  { %760 = vmatprep.mubr.bf16.mxu0 %v1343_v0 }
  0xa8   :  { %761 = vmatmul.mubr.bf16.gmra.mrb[40].mxu0 %v1220_v38 }
  0xa9   :  { %770 = vmatprep.mubr.bf16.mxu0 %v1343_v0 }
  0xb0   :  { %771 = vmatmul.mubr.bf16.gmra.mrb[44].mxu0 %v1221_v40 }
  0xb1   :  { %780 = vmatprep.mubr.bf16.mxu0 %v1343_v0 }
  0xb8   :  { %781 = vmatmul.mubr.bf16.gmra.mrb[48].mxu0 %v1222_v45 }
  0xb9   :  { %790 = vmatprep.mubr.bf16.mxu0 %v1343_v0 }
  0xc0   :  { %791 = vmatmul.mubr.bf16.gmra.mrb[52].mxu0 %v1223_v46 }
  0xc1   :  { %800 = vmatprep.mubr.bf16.mxu0 %v1343_v0 }
  0xc8   :  { %801 = vmatmul.mubr.bf16.gmra.mrb[56].mxu0 %v1224_v47 }
  0xc9   :  { %810 = vmatprep.mubr.bf16.mxu0 %v1343_v0 }
  0xd0   :  { %811 = vmatmul.mubr.bf16.gmra.mrb[60].mxu0 %v1225_v48 }
 0x12b   :  { %v302_v56 = vpop.f32.mrb[0].mxu0 }
 0x12c   :  { %v303_v57 = vadd.f32 %v302_v56, %v1482_v54  ;;  %v304_v58 = vpop.f32.mrb[1].mxu0 }
 0x12d   :  { %v305_v59 = vadd.f32 %v304_v58, %v1484_v55  ;;  %v306_v60 = vpop.f32.mrb[2].mxu0 }
 0x12e   :  { %v307_v61 = vadd.f32 %v306_v60, %v1482_v54  ;;  %v308_v62 = vpop.f32.mrb[3].mxu0  ;;  %v381_v0 = vmax.f32 %v303_v57, 0.0 }
 0x12f   :  { %v309_v63 = vadd.f32 %v308_v62, %v1484_v55  ;;  %v382_v2 = vmax.f32 %v305_v59, 0.0 }
 0x130   :  { %v383_v1 = vmax.f32 %v307_v61, 0.0 }
 0x131   :  { %v384_v3 = vmax.f32 %v309_v63, 0.0 }
 0x132   :  { %v413_v4 = vpack.c.bf16 %v383_v1, %v381_v0 }
 0x133   :  { %v312_v5 = vpop.f32.mrb[4].mxu0  ;;  %v414_v6 = vpack.c.bf16 %v384_v3, %v382_v2 }
 0x134   :  { %v313_v7 = vadd.f32 %v312_v5, %v1482_v54  ;;  %v314_v8 = vpop.f32.mrb[5].mxu0 }
 0x135   :  { %v315_v9 = vadd.f32 %v314_v8, %v1484_v55  ;;  %v316_v10 = vpop.f32.mrb[6].mxu0  ;;  %563 = vmatprep.mubr.bf16.mxu1 %v414_v6 }
 0x136   :  { %v317_v11 = vadd.f32 %v316_v10, %v1482_v54  ;;  %v318_v12 = vpop.f32.mrb[7].mxu0  ;;  %564 = vmatmul.mubr.bf16.vlgmr.msra.gmra.mrb[0].mxu1 %v413_v4  ;;  %v385_v14 = vmax.f32 %v313_v7, 0.0 }
 0x137   :  { %v319_v13 = vadd.f32 %v318_v12, %v1484_v55  ;;  %1114 = vmatpush3.bf16.msra.mxu1 %v1417_v19  ;;  %v386_v16 = vmax.f32 %v315_v9, 0.0 }
 0x138   :  { %v387_v15 = vmax.f32 %v317_v11, 0.0  ;;  %1115 = vmatprep.subr.bf16.mxu1 %v1420_v20 }
 0x139   :  { %v388_v17 = vmax.f32 %v319_v13, 0.0 }
 0x13a   :  { %v415_v18 = vpack.c.bf16 %v387_v15, %v385_v14 }
 0x13b   :  { %v416_v25 = vpack.c.bf16 %v388_v17, %v386_v16  ;;  %v322_v30 = vpop.f32.mrb[8].mxu0  ;;  %1116 = vmatpush3.bf16.msra.mxu1 %v1423_v21 }
 0x13c   :  { %v323_v31 = vadd.f32 %v322_v30, %v1482_v54  ;;  %v324_v32 = vpop.f32.mrb[9].mxu0  ;;  %1117 = vmatprep.subr.bf16.mxu1 %v1426_v22 }
 0x13d   :  { %v325_v33 = vadd.f32 %v324_v32, %v1484_v55  ;;  %v326_v34 = vpop.f32.mrb[10].mxu0  ;;  %571 = vmatprep.mubr.bf16.mxu1 %v416_v25 }
 0x13e   :  { %v327_v19 = vadd.f32 %v326_v34, %v1482_v54  ;;  %v328_v35 = vpop.f32.mrb[11].mxu0  ;;  %572 = vmatmul.mubr.bf16.gmra.mrb[4].mxu1 %v415_v18  ;;  %v389_v36 = vmax.f32 %v323_v31, 0.0 }
 0x13f   :  { %v329_v20 = vadd.f32 %v328_v35, %v1484_v55  ;;  %1118 = vmatpush3.bf16.msra.mxu1 %v1429_v23  ;;  %v390_v21 = vmax.f32 %v325_v33, 0.0 }
 0x140   :  { %v391_v37 = vmax.f32 %v327_v19, 0.0  ;;  %1119 = vmatprep.subr.bf16.mxu1 %v1432_v24 }
 0x141   :  { %v392_v38 = vmax.f32 %v329_v20, 0.0 }
 0x142   :  { %v417_v40 = vpack.c.bf16 %v391_v37, %v389_v36 }
 0x143   :  { %v418_v22 = vpack.c.bf16 %v392_v38, %v390_v21  ;;  %v332_v45 = vpop.f32.mrb[12].mxu0  ;;  %1120 = vmatpush3.bf16.msra.mxu1 %v1435_v26 }
 0x144   :  { %v333_v46 = vadd.f32 %v332_v45, %v1482_v54  ;;  %v334_v47 = vpop.f32.mrb[13].mxu0  ;;  %1121 = vmatprep.subr.bf16.mxu1 %v1438_v27 }
 0x145   :  { %v335_v48 = vadd.f32 %v334_v47, %v1484_v55  ;;  %v336_v49 = vpop.f32.mrb[14].mxu0  ;;  %579 = vmatprep.mubr.bf16.mxu1 %v418_v22 }
 0x146   :  { %v337_v23 = vadd.f32 %v336_v49, %v1482_v54  ;;  %v338_v50 = vpop.f32.mrb[15].mxu0  ;;  %580 = vmatmul.mubr.bf16.gmra.mrb[8].mxu1 %v417_v40  ;;  %v393_v51 = vmax.f32 %v333_v46, 0.0 }
 0x147   :  { %v339_v24 = vadd.f32 %v338_v50, %v1484_v55  ;;  %1122 = vmatpush3.bf16.msra.mxu1 %v1442_v28  ;;  %v394_v26 = vmax.f32 %v335_v48, 0.0 }
 0x148   :  { %v395_v52 = vmax.f32 %v337_v23, 0.0  ;;  %1123 = vmatprep.subr.bf16.mxu1 %v1445_v29 }
 0x149   :  { %v396_v53 = vmax.f32 %v339_v24, 0.0 }
 0x14a   :  { %v419_v56 = vpack.c.bf16 %v395_v52, %v393_v51 }
 0x14b   :  { %v420_v27 = vpack.c.bf16 %v396_v53, %v394_v26  ;;  %v342_v57 = vpop.f32.mrb[16].mxu0  ;;  %1124 = vmatpush3.bf16.msra.mxu1 %v1459_v39 }
 0x14c   :  { %v343_v58 = vadd.f32 %v342_v57, %v1482_v54  ;;  %v344_v59 = vpop.f32.mrb[17].mxu0  ;;  %1125 = vmatprep.subr.bf16.mxu1 %v1462_v41 }
 0x14d   :  { %v345_v60 = vadd.f32 %v344_v59, %v1484_v55  ;;  %v346_v61 = vpop.f32.mrb[18].mxu0  ;;  %587 = vmatprep.mubr.bf16.mxu1 %v420_v27 }
 0x14e   :  { %v347_v28 = vadd.f32 %v346_v61, %v1482_v54  ;;  %v348_v62 = vpop.f32.mrb[19].mxu0  ;;  %588 = vmatmul.mubr.bf16.gmra.mrb[12].mxu1 %v419_v56  ;;  %v397_v63 = vmax.f32 %v343_v58, 0.0 }
 0x14f   :  { %v349_v29 = vadd.f32 %v348_v62, %v1484_v55  ;;  %1126 = vmatpush3.bf16.msra.mxu1 %v1464_v42  ;;  %v398_v39 = vmax.f32 %v345_v60, 0.0 }
 0x150   :  { %v399_v0 = vmax.f32 %v347_v28, 0.0  ;;  %1127 = vmatprep.subr.bf16.mxu1 %v1468_v43 }
 0x151   :  { %v400_v1 = vmax.f32 %v349_v29, 0.0 }
 0x152   :  { %v421_v2 = vpack.c.bf16 %v399_v0, %v397_v63 }
 0x153   :  { %v422_v41 = vpack.c.bf16 %v400_v1, %v398_v39  ;;  %v352_v3 = vpop.f32.mrb[20].mxu0  ;;  %1128 = vmatpush3.bf16.msra.mxu1 %v1471_v44 }
 0x154   :  { %v353_v4 = vadd.f32 %v352_v3, %v1482_v54  ;;  %v354_v5 = vpop.f32.mrb[21].mxu0 }
 0x155   :  { %v355_v6 = vadd.f32 %v354_v5, %v1484_v55  ;;  %v356_v7 = vpop.f32.mrb[22].mxu0  ;;  %595 = vmatprep.mubr.bf16.mxu1 %v422_v41 }
 0x156   :  { %v357_v42 = vadd.f32 %v356_v7, %v1482_v54  ;;  %v358_v8 = vpop.f32.mrb[23].mxu0  ;;  %596 = vmatmul.mubr.bf16.gmra.mrb[16].mxu1 %v421_v2  ;;  %v401_v9 = vmax.f32 %v353_v4, 0.0 }
 0x157   :  { %v359_v43 = vadd.f32 %v358_v8, %v1484_v55  ;;  %v402_v11 = vmax.f32 %v355_v6, 0.0 }
 0x158   :  { %v403_v10 = vmax.f32 %v357_v42, 0.0 }
 0x159   :  { %v404_v12 = vmax.f32 %v359_v43, 0.0 }
 0x15a   :  { %v423_v13 = vpack.c.bf16 %v403_v10, %v401_v9 }
 0x15b   :  { %v424_v14 = vpack.c.bf16 %v404_v12, %v402_v11  ;;  %v362_v44 = vpop.f32.mrb[24].mxu0 }
 0x15c   :  { %v363_v15 = vadd.f32 %v362_v44, %v1482_v54  ;;  %v364_v16 = vpop.f32.mrb[25].mxu0 }
 0x15d   :  { %v365_v17 = vadd.f32 %v364_v16, %v1484_v55  ;;  %v366_v18 = vpop.f32.mrb[26].mxu0  ;;  %603 = vmatprep.mubr.bf16.mxu1 %v424_v14 }
 0x15e   :  { %v367_v25 = vadd.f32 %v366_v18, %v1482_v54  ;;  %v368_v30 = vpop.f32.mrb[27].mxu0  ;;  %604 = vmatmul.mubr.bf16.gmra.mrb[20].mxu1 %v423_v13  ;;  %v405_v32 = vmax.f32 %v363_v15, 0.0 }
 0x15f   :  { %v369_v31 = vadd.f32 %v368_v30, %v1484_v55  ;;  %v406_v34 = vmax.f32 %v365_v17, 0.0 }
 0x160   :  { %v407_v33 = vmax.f32 %v367_v25, 0.0 }
 0x161   :  { %v408_v19 = vmax.f32 %v369_v31, 0.0 }
 0x162   :  { %v425_v35 = vpack.c.bf16 %v407_v33, %v405_v32 }
 0x163   :  { %v426_v20 = vpack.c.bf16 %v408_v19, %v406_v34  ;;  %v372_v36 = vpop.f32.mrb[28].mxu0 }
 0x164   :  { %v373_v37 = vadd.f32 %v372_v36, %v1482_v54  ;;  %v374_v21 = vpop.f32.mrb[29].mxu0 }
 0x165   :  { %v375_v38 = vadd.f32 %v374_v21, %v1484_v55  ;;  %v376_v40 = vpop.f32.mrb[30].mxu0  ;;  %611 = vmatprep.mubr.bf16.mxu1 %v426_v20 }
 0x166   :  { %v377_v22 = vadd.f32 %v376_v40, %v1482_v54  ;;  %v378_v45 = vpop.f32.mrb[31].mxu0  ;;  %612 = vmatmul.mubr.bf16.gmra.mrb[24].mxu1 %v425_v35  ;;  %v409_v47 = vmax.f32 %v373_v37, 0.0 }
 0x167   :  { %v379_v46 = vadd.f32 %v378_v45, %v1484_v55  ;;  %v410_v49 = vmax.f32 %v375_v38, 0.0 }
 0x168   :  { %v411_v48 = vmax.f32 %v377_v22, 0.0 }
 0x169   :  { %v412_v23 = vmax.f32 %v379_v46, 0.0 }
 0x16a   :  { %v427_v50 = vpack.c.bf16 %v411_v48, %v409_v47 }
 0x16b   :  { %v428_v24 = vpack.c.bf16 %v412_v23, %v410_v49  ;;  %v742_v51 = vpop.f32.mrb[32].mxu0 }
 0x16c   :  { %v743_v52 = vadd.f32 %v742_v51, %v1482_v54  ;;  %v744_v26 = vpop.f32.mrb[33].mxu0 }
 0x16d   :  { %v745_v53 = vadd.f32 %v744_v26, %v1484_v55  ;;  %619 = vmatprep.mubr.bf16.mxu1 %v428_v24  ;;  %v746_v56 = vpop.f32.mrb[34].mxu0 }
 0x16e   :  { %v747_v27 = vadd.f32 %v746_v56, %v1482_v54  ;;  %620 = vmatmul.mubr.bf16.gmra.mrb[28].mxu1 %v427_v50  ;;  %v748_v57 = vpop.f32.mrb[35].mxu0  ;;  %v821_v59 = vmax.f32 %v743_v52, 0.0 }
 0x16f   :  { %v749_v58 = vadd.f32 %v748_v57, %v1484_v55  ;;  %v822_v61 = vmax.f32 %v745_v53, 0.0 }
 0x170   :  { %v823_v60 = vmax.f32 %v747_v27, 0.0 }
 0x171   :  { %v824_v28 = vmax.f32 %v749_v58, 0.0 }
 0x172   :  { %v853_v62 = vpack.c.bf16 %v823_v60, %v821_v59 }
 0x173   :  { %v854_v29 = vpack.c.bf16 %v824_v28, %v822_v61  ;;  %v752_v63 = vpop.f32.mrb[36].mxu0 }
 0x174   :  { %v753_v0 = vadd.f32 %v752_v63, %v1482_v54  ;;  %v754_v39 = vpop.f32.mrb[37].mxu0 }
 0x175   :  { %v755_v1 = vadd.f32 %v754_v39, %v1484_v55  ;;  %v756_v2 = vpop.f32.mrb[38].mxu0  ;;  %901 = vmatprep.mubr.bf16.mxu1 %v854_v29 }
 0x176   :  { %v757_v41 = vadd.f32 %v756_v2, %v1482_v54  ;;  %v758_v3 = vpop.f32.mrb[39].mxu0  ;;  %902 = vmatmul.mubr.bf16.vlgmr.msra.gmra.mrb[32].mxu1 %v853_v62  ;;  %v825_v5 = vmax.f32 %v753_v0, 0.0 }
 0x177   :  { %v759_v4 = vadd.f32 %v758_v3, %v1484_v55  ;;  %v826_v7 = vmax.f32 %v755_v1, 0.0 }
 0x178   :  { %v827_v6 = vmax.f32 %v757_v41, 0.0 }
 0x179   :  { %v828_v42 = vmax.f32 %v759_v4, 0.0 }
 0x17a   :  { %v855_v8 = vpack.c.bf16 %v827_v6, %v825_v5 }
 0x17b   :  { %v856_v43 = vpack.c.bf16 %v828_v42, %v826_v7  ;;  %v762_v9 = vpop.f32.mrb[40].mxu0 }
 0x17c   :  { %v763_v10 = vadd.f32 %v762_v9, %v1482_v54  ;;  %v764_v11 = vpop.f32.mrb[41].mxu0 }
 0x17d   :  { %v765_v12 = vadd.f32 %v764_v11, %v1484_v55  ;;  %v766_v13 = vpop.f32.mrb[42].mxu0  ;;  %909 = vmatprep.mubr.bf16.mxu1 %v856_v43 }
 0x17e   :  { %v767_v14 = vadd.f32 %v766_v13, %v1482_v54  ;;  %v768_v44 = vpop.f32.mrb[43].mxu0  ;;  %910 = vmatmul.mubr.bf16.gmra.mrb[36].mxu1 %v855_v8  ;;  %v829_v16 = vmax.f32 %v763_v10, 0.0 }
 0x17f   :  { %v769_v15 = vadd.f32 %v768_v44, %v1484_v55  ;;  %v830_v18 = vmax.f32 %v765_v12, 0.0 }
 0x180   :  { %v831_v17 = vmax.f32 %v767_v14, 0.0 }
 0x181   :  { %v832_v25 = vmax.f32 %v769_v15, 0.0 }
 0x182   :  { %v857_v30 = vpack.c.bf16 %v831_v17, %v829_v16 }
 0x183   :  { %v858_v31 = vpack.c.bf16 %v832_v25, %v830_v18  ;;  %v772_v32 = vpop.f32.mrb[44].mxu0 }
 0x184   :  { %v773_v33 = vadd.f32 %v772_v32, %v1482_v54  ;;  %v774_v34 = vpop.f32.mrb[45].mxu0 }
 0x185   :  { %v775_v19 = vadd.f32 %v774_v34, %v1484_v55  ;;  %v776_v35 = vpop.f32.mrb[46].mxu0  ;;  %917 = vmatprep.mubr.bf16.mxu1 %v858_v31 }
 0x186   :  { %v777_v20 = vadd.f32 %v776_v35, %v1482_v54  ;;  %v778_v36 = vpop.f32.mrb[47].mxu0  ;;  %918 = vmatmul.mubr.bf16.gmra.mrb[40].mxu1 %v857_v30  ;;  %v833_v21 = vmax.f32 %v773_v33, 0.0 }
 0x187   :  { %v779_v37 = vadd.f32 %v778_v36, %v1484_v55  ;;  %v834_v40 = vmax.f32 %v775_v19, 0.0 }
 0x188   :  { %v835_v38 = vmax.f32 %v777_v20, 0.0 }
 0x189   :  { %v836_v22 = vmax.f32 %v779_v37, 0.0 }
 0x18a   :  { %v859_v45 = vpack.c.bf16 %v835_v38, %v833_v21  ;;  %v1568_v38 = vld [vmem:[%s1621_s4] ss:$0 sm:$0xff]  ;;  %s1344_s4 = smov [#allocation8]  }
 0x18b   :  { %v860_v46 = vpack.c.bf16 %v836_v22, %v834_v40  ;;  %v782_v47 = vpop.f32.mrb[48].mxu0  ;;  %s987_s10 = sshll.u32 %s1344_s4, 4  ;;  %s988_s10 = int_to_ptr.vmem [resolvable:$true] %s987_s10 }
 0x18c   :  { %v783_v48 = vadd.f32 %v782_v47, %v1482_v54  ;;  %v784_v49 = vpop.f32.mrb[49].mxu0  ;;  %s1308_s11 = scalar_lea.vmem %s988_s10, 4096  ;;  %p1313_p11 = scmp.lt.s32.totalorder %s988_s10, %s988_s10 }
 0x18d   :  { %v785_v23 = vadd.f32 %v784_v49, %v1484_v55  ;;  %v786_v50 = vpop.f32.mrb[50].mxu0  ;;  %925 = vmatprep.mubr.bf16.mxu1 %v860_v46  ;;  %p1309_p10 = scmp.ne.s32.totalorder %s988_s10, %s1308_s11  ;;  %p1314_p12 = scmp.lt.s32.totalorder %s1308_s11, %s1308_s11 }
 0x18e   :  { %v787_v24 = vadd.f32 %v786_v50, %v1482_v54  ;;  %v788_v51 = vpop.f32.mrb[51].mxu0  ;;  %926 = vmatmul.mubr.bf16.gmra.mrb[44].mxu1 %v859_v45  ;;  %v837_v26 = vmax.f32 %v783_v48, 0.0 }
 0x18f   :  { %v789_v52 = vadd.f32 %v788_v51, %v1484_v55  ;;  %v838_v56 = vmax.f32 %v785_v23, 0.0  ;;  %p1315_p13 = por %p1314_p12, %p1313_p11 }
 0x190   :  { %v839_v53 = vmax.f32 %v787_v24, 0.0 }
 0x191   :  { %v840_v27 = vmax.f32 %v789_v52, 0.0  ;;  %p1316_p0 = pnand %p1315_p13, %p1309_p10 }
 0x192   :  { %v861_v57 = vpack.c.bf16 %v839_v53, %v837_v26 }
 0x193   :  { %v862_v58 = vpack.c.bf16 %v840_v27, %v838_v56  ;;  %v792_v59 = vpop.f32.mrb[52].mxu0 }
 0x194   :  { %v793_v60 = vadd.f32 %v792_v59, %v1482_v54  ;;  %v794_v61 = vpop.f32.mrb[53].mxu0 }
 0x195   :  { %v795_v28 = vadd.f32 %v794_v61, %v1484_v55  ;;  %v796_v62 = vpop.f32.mrb[54].mxu0  ;;  %933 = vmatprep.mubr.bf16.mxu1 %v862_v58 }
 0x196   :  { %v797_v29 = vadd.f32 %v796_v62, %v1482_v54  ;;  %v798_v63 = vpop.f32.mrb[55].mxu0  ;;  %934 = vmatmul.mubr.bf16.gmra.mrb[48].mxu1 %v861_v57  ;;  %v841_v39 = vmax.f32 %v793_v60, 0.0 }
 0x197   :  { %v799_v0 = vadd.f32 %v798_v63, %v1484_v55  ;;  %v842_v2 = vmax.f32 %v795_v28, 0.0 }
 0x198   :  { %v843_v1 = vmax.f32 %v797_v29, 0.0 }
 0x199   :  { %v844_v41 = vmax.f32 %v799_v0, 0.0 }
 0x19a   :  { %v863_v3 = vpack.c.bf16 %v843_v1, %v841_v39 }
 0x19b   :  { %v864_v4 = vpack.c.bf16 %v844_v41, %v842_v2  ;;  %v802_v5 = vpop.f32.mrb[56].mxu0 }
 0x19c   :  { %v803_v6 = vadd.f32 %v802_v5, %v1482_v54  ;;  %v804_v7 = vpop.f32.mrb[57].mxu0 }
 0x19d   :  { %v805_v42 = vadd.f32 %v804_v7, %v1484_v55  ;;  %v806_v8 = vpop.f32.mrb[58].mxu0  ;;  %941 = vmatprep.mubr.bf16.mxu1 %v864_v4 }
 0x19e   :  { %v807_v43 = vadd.f32 %v806_v8, %v1482_v54  ;;  %v808_v9 = vpop.f32.mrb[59].mxu0  ;;  %942 = vmatmul.mubr.bf16.gmra.mrb[52].mxu1 %v863_v3  ;;  %v845_v11 = vmax.f32 %v803_v6, 0.0 }
 0x19f   :  { %v809_v10 = vadd.f32 %v808_v9, %v1484_v55  ;;  %v846_v13 = vmax.f32 %v805_v42, 0.0 }
 0x1a0   :  { %v847_v12 = vmax.f32 %v807_v43, 0.0 }
 0x1a1   :  { %v848_v14 = vmax.f32 %v809_v10, 0.0 }
 0x1a2   :  { %v865_v44 = vpack.c.bf16 %v847_v12, %v845_v11 }
 0x1a3   :  { %v866_v15 = vpack.c.bf16 %v848_v14, %v846_v13  ;;  %v812_v16 = vpop.f32.mrb[60].mxu0 }
 0x1a4   :  { %v813_v17 = vadd.f32 %v812_v16, %v1482_v54  ;;  %v814_v18 = vpop.f32.mrb[61].mxu0 }
 0x1a5   :  { %v815_v25 = vadd.f32 %v814_v18, %v1484_v55  ;;  %v816_v30 = vpop.f32.mrb[62].mxu0  ;;  %949 = vmatprep.mubr.bf16.mxu1 %v866_v15 }
 0x1a6   :  { %v817_v31 = vadd.f32 %v816_v30, %v1482_v54  ;;  %v818_v32 = vpop.f32.mrb[63].mxu0  ;;  %950 = vmatmul.mubr.bf16.gmra.mrb[56].mxu1 %v865_v44  ;;  %v849_v34 = vmax.f32 %v813_v17, 0.0 }
 0x1a7   :  { %v819_v33 = vadd.f32 %v818_v32, %v1484_v55  ;;  %v850_v35 = vmax.f32 %v815_v25, 0.0 }
 0x1a8   :  { %v851_v19 = vmax.f32 %v817_v31, 0.0 }
 0x1a9   :  { %v852_v20 = vmax.f32 %v819_v33, 0.0 }
 0x1aa   :  { %v867_v36 = vpack.c.bf16 %v851_v19, %v849_v34 }
 0x1ab   :  { %v868_v37 = vpack.c.bf16 %v852_v20, %v850_v35 }
 0x1ad   :  { %957 = vmatprep.mubr.bf16.mxu1 %v868_v37 }
 0x1ae   :  { %958 = vmatmul.mubr.bf16.gmra.mrb[60].mxu1 %v867_v36 }
 0x209   :  { %v1065_v21 = vpop.f32.mrb[0].mxu1 }
 0x20a   :  { %v1066_v40 = vpop.f32.mrb[1].mxu1 }
 0x20b   :  { %v1067_v54 = vadd.f32 %v1066_v40, %v1065_v21  ;;  %v1068_v22 = vpop.f32.mrb[2].mxu1 }
 0x20c   :  { %v1069_v45 = vpop.f32.mrb[3].mxu1 }
 0x20d   :  { %v566_v55 = vadd.f32 %v1067_v54, %v1568_v38  ;;  %v1070_v46 = vadd.f32 %v1069_v45, %v1068_v22 }
 0x20f   :  { %628 = vst [vmem:[#allocation8] sm:$0xff] %v566_v55  ;;  %v569_v47 = vadd.f32 %v1070_v46, %v1568_v38 }
 0x211   :  { %629 = vst [vmem:[#allocation8 + $0x8] sm:$0xff] %v569_v47  ;;  %v1071_v48 = vpop.f32.mrb[4].mxu1 }
 0x212   :  { %v1072_v49 = vpop.f32.mrb[5].mxu1 }
 0x213   :  { %v1073_v23 = vadd.f32 %v1072_v49, %v1071_v48  ;;  %v1074_v50 = vpop.f32.mrb[6].mxu1 }
 0x214   :  { %v1075_v24 = vpop.f32.mrb[7].mxu1 }
 0x215   :  { %v574_v51 = vadd.f32 %v1073_v23, %v1568_v38  ;;  %v1076_v52 = vadd.f32 %v1075_v24, %v1074_v50 }
 0x217   :  { %630 = vst [vmem:[#allocation8 + $0x10] sm:$0xff] %v574_v51  ;;  %v577_v26 = vadd.f32 %v1076_v52, %v1568_v38 }
 0x219   :  { %631 = vst [vmem:[#allocation8 + $0x18] sm:$0xff] %v577_v26  ;;  %v1077_v53 = vpop.f32.mrb[8].mxu1 }
 0x21a   :  { %v1078_v56 = vpop.f32.mrb[9].mxu1 }
 0x21b   :  { %v1079_v27 = vadd.f32 %v1078_v56, %v1077_v53  ;;  %v1080_v57 = vpop.f32.mrb[10].mxu1 }
 0x21c   :  { %v1081_v58 = vpop.f32.mrb[11].mxu1 }
 0x21d   :  { %v582_v59 = vadd.f32 %v1079_v27, %v1568_v38  ;;  %v1082_v60 = vadd.f32 %v1081_v58, %v1080_v57 }
 0x21f   :  { %632 = vst [vmem:[#allocation8 + $0x20] sm:$0xff] %v582_v59  ;;  %v585_v61 = vadd.f32 %v1082_v60, %v1568_v38 }
 0x221   :  { %633 = vst [vmem:[#allocation8 + $0x28] sm:$0xff] %v585_v61  ;;  %v1083_v28 = vpop.f32.mrb[12].mxu1 }
 0x222   :  { %v1084_v62 = vpop.f32.mrb[13].mxu1 }
 0x223   :  { %v1085_v29 = vadd.f32 %v1084_v62, %v1083_v28  ;;  %v1086_v63 = vpop.f32.mrb[14].mxu1 }
 0x224   :  { %v1087_v0 = vpop.f32.mrb[15].mxu1 }
 0x225   :  { %v590_v39 = vadd.f32 %v1085_v29, %v1568_v38  ;;  %v1088_v1 = vadd.f32 %v1087_v0, %v1086_v63 }
 0x227   :  { %634 = vst [vmem:[#allocation8 + $0x30] sm:$0xff] %v590_v39  ;;  %v593_v2 = vadd.f32 %v1088_v1, %v1568_v38 }
 0x229   :  { %635 = vst [vmem:[#allocation8 + $0x38] sm:$0xff] %v593_v2  ;;  %v1089_v41 = vpop.f32.mrb[16].mxu1 }
 0x22a   :  { %v1090_v3 = vpop.f32.mrb[17].mxu1 }
 0x22b   :  { %v1091_v4 = vadd.f32 %v1090_v3, %v1089_v41  ;;  %v1092_v5 = vpop.f32.mrb[18].mxu1 }
 0x22c   :  { %v1093_v6 = vpop.f32.mrb[19].mxu1 }
 0x22d   :  { %v598_v7 = vadd.f32 %v1091_v4, %v1568_v38  ;;  %v1094_v42 = vadd.f32 %v1093_v6, %v1092_v5 }
 0x22f   :  { %636 = vst [vmem:[#allocation8 + $0x40] sm:$0xff] %v598_v7  ;;  %v601_v8 = vadd.f32 %v1094_v42, %v1568_v38 }
 0x231   :  { %637 = vst [vmem:[#allocation8 + $0x48] sm:$0xff] %v601_v8  ;;  %v1095_v43 = vpop.f32.mrb[20].mxu1 }
 0x232   :  { %v1096_v9 = vpop.f32.mrb[21].mxu1 }
 0x233   :  { %v1097_v10 = vadd.f32 %v1096_v9, %v1095_v43  ;;  %v1098_v11 = vpop.f32.mrb[22].mxu1 }
 0x234   :  { %v1099_v12 = vpop.f32.mrb[23].mxu1 }
 0x235   :  { %v606_v13 = vadd.f32 %v1097_v10, %v1568_v38  ;;  %v1100_v14 = vadd.f32 %v1099_v12, %v1098_v11 }
 0x237   :  { %638 = vst [vmem:[#allocation8 + $0x50] sm:$0xff] %v606_v13  ;;  %v609_v44 = vadd.f32 %v1100_v14, %v1568_v38 }
 0x239   :  { %639 = vst [vmem:[#allocation8 + $0x58] sm:$0xff] %v609_v44  ;;  %v1101_v15 = vpop.f32.mrb[24].mxu1 }
 0x23a   :  { %v1102_v16 = vpop.f32.mrb[25].mxu1 }
 0x23b   :  { %v1103_v17 = vadd.f32 %v1102_v16, %v1101_v15  ;;  %v1104_v18 = vpop.f32.mrb[26].mxu1 }
 0x23c   :  { %v1105_v25 = vpop.f32.mrb[27].mxu1 }
 0x23d   :  { %v614_v30 = vadd.f32 %v1103_v17, %v1568_v38  ;;  %v1106_v31 = vadd.f32 %v1105_v25, %v1104_v18 }
 0x23f   :  { %640 = vst [vmem:[#allocation8 + $0x60] sm:$0xff] %v614_v30  ;;  %v617_v32 = vadd.f32 %v1106_v31, %v1568_v38 }
 0x241   :  { %641 = vst [vmem:[#allocation8 + $0x68] sm:$0xff] %v617_v32  ;;  %v1107_v33 = vpop.f32.mrb[28].mxu1 }
 0x242   :  { %v1108_v34 = vpop.f32.mrb[29].mxu1 }
 0x243   :  { %v1109_v19 = vadd.f32 %v1108_v34, %v1107_v33  ;;  %v1110_v35 = vpop.f32.mrb[30].mxu1 }
 0x244   :  { %v1111_v20 = vpop.f32.mrb[31].mxu1 }
 0x245   :  { %v622_v36 = vadd.f32 %v1109_v19, %v1568_v38  ;;  %v1112_v37 = vadd.f32 %v1111_v20, %v1110_v35 }
 0x247   :  { %642 = vst [vmem:[#allocation8 + $0x70] sm:$0xff] %v622_v36  ;;  %v625_v21 = vadd.f32 %v1112_v37, %v1568_v38 }
 0x249   :  { %643 = vst [vmem:[#allocation8 + $0x78] sm:$0xff] %v625_v21  ;;  %v1129_v40 = vpop.f32.mrb[32].mxu1 }
 0x24a   :  { %v1130_v54 = vpop.f32.mrb[33].mxu1 }
 0x24b   :  { %v1131_v22 = vadd.f32 %v1130_v54, %v1129_v40  ;;  %v1132_v45 = vpop.f32.mrb[34].mxu1 }
 0x24c   :  { %v1133_v55 = vpop.f32.mrb[35].mxu1 }
 0x24d   :  { %v904_v46 = vadd.f32 %v1131_v22, %v1568_v38  ;;  %v1134_v47 = vadd.f32 %v1133_v55, %v1132_v45 }
 0x24f   :  { %966 = vst [vmem:[#allocation8 + $0x80] sm:$0xff] %v904_v46  ;;  %v907_v48 = vadd.f32 %v1134_v47, %v1568_v38 }
 0x251   :  { %967 = vst [vmem:[#allocation8 + $0x88] sm:$0xff] %v907_v48  ;;  %v1135_v49 = vpop.f32.mrb[36].mxu1 }
 0x252   :  { %v1136_v23 = vpop.f32.mrb[37].mxu1 }
 0x253   :  { %v1137_v50 = vadd.f32 %v1136_v23, %v1135_v49  ;;  %v1138_v24 = vpop.f32.mrb[38].mxu1 }
 0x254   :  { %v1139_v51 = vpop.f32.mrb[39].mxu1 }
 0x255   :  { %v912_v52 = vadd.f32 %v1137_v50, %v1568_v38  ;;  %v1140_v26 = vadd.f32 %v1139_v51, %v1138_v24 }
 0x257   :  { %968 = vst [vmem:[#allocation8 + $0x90] sm:$0xff] %v912_v52  ;;  %v915_v53 = vadd.f32 %v1140_v26, %v1568_v38 }
 0x259   :  { %969 = vst [vmem:[#allocation8 + $0x98] sm:$0xff] %v915_v53  ;;  %v1141_v56 = vpop.f32.mrb[40].mxu1 }
 0x25a   :  { %v1142_v27 = vpop.f32.mrb[41].mxu1 }
 0x25b   :  { %v1143_v57 = vadd.f32 %v1142_v27, %v1141_v56  ;;  %v1144_v58 = vpop.f32.mrb[42].mxu1 }
 0x25c   :  { %v1145_v59 = vpop.f32.mrb[43].mxu1 }
 0x25d   :  { %v920_v60 = vadd.f32 %v1143_v57, %v1568_v38  ;;  %v1146_v61 = vadd.f32 %v1145_v59, %v1144_v58 }
 0x25f   :  { %970 = vst [vmem:[#allocation8 + $0xa0] sm:$0xff] %v920_v60  ;;  %v923_v28 = vadd.f32 %v1146_v61, %v1568_v38 }
 0x261   :  { %971 = vst [vmem:[#allocation8 + $0xa8] sm:$0xff] %v923_v28  ;;  %v1147_v62 = vpop.f32.mrb[44].mxu1 }
 0x262   :  { %v1148_v29 = vpop.f32.mrb[45].mxu1 }
 0x263   :  { %v1149_v63 = vadd.f32 %v1148_v29, %v1147_v62  ;;  %v1150_v0 = vpop.f32.mrb[46].mxu1 }
 0x264   :  { %v1151_v39 = vpop.f32.mrb[47].mxu1 }
 0x265   :  { %v928_v1 = vadd.f32 %v1149_v63, %v1568_v38  ;;  %v1152_v2 = vadd.f32 %v1151_v39, %v1150_v0 }
 0x267   :  { %972 = vst [vmem:[#allocation8 + $0xb0] sm:$0xff] %v928_v1  ;;  %v931_v41 = vadd.f32 %v1152_v2, %v1568_v38 }
 0x269   :  { %973 = vst [vmem:[#allocation8 + $0xb8] sm:$0xff] %v931_v41  ;;  %v1153_v3 = vpop.f32.mrb[48].mxu1 }
 0x26a   :  { %v1154_v4 = vpop.f32.mrb[49].mxu1 }
 0x26b   :  { %v1155_v5 = vadd.f32 %v1154_v4, %v1153_v3  ;;  %v1156_v6 = vpop.f32.mrb[50].mxu1 }
 0x26c   :  { %v1157_v7 = vpop.f32.mrb[51].mxu1 }
 0x26d   :  { %v936_v42 = vadd.f32 %v1155_v5, %v1568_v38  ;;  %v1158_v8 = vadd.f32 %v1157_v7, %v1156_v6 }
 0x26f   :  { %974 = vst [vmem:[#allocation8 + $0xc0] sm:$0xff] %v936_v42  ;;  %v939_v43 = vadd.f32 %v1158_v8, %v1568_v38 }
 0x271   :  { %975 = vst [vmem:[#allocation8 + $0xc8] sm:$0xff] %v939_v43  ;;  %v1159_v9 = vpop.f32.mrb[52].mxu1 }
 0x272   :  { %v1160_v10 = vpop.f32.mrb[53].mxu1 }
 0x273   :  { %v1161_v11 = vadd.f32 %v1160_v10, %v1159_v9  ;;  %v1162_v12 = vpop.f32.mrb[54].mxu1 }
 0x274   :  { %v1163_v13 = vpop.f32.mrb[55].mxu1 }
 0x275   :  { %v944_v14 = vadd.f32 %v1161_v11, %v1568_v38  ;;  %v1164_v44 = vadd.f32 %v1163_v13, %v1162_v12 }
 0x277   :  { %976 = vst [vmem:[#allocation8 + $0xd0] sm:$0xff] %v944_v14  ;;  %v947_v15 = vadd.f32 %v1164_v44, %v1568_v38 }
 0x279   :  { %977 = vst [vmem:[#allocation8 + $0xd8] sm:$0xff] %v947_v15  ;;  %v1165_v16 = vpop.f32.mrb[56].mxu1 }
 0x27a   :  { %v1166_v17 = vpop.f32.mrb[57].mxu1 }
 0x27b   :  { %v1167_v18 = vadd.f32 %v1166_v17, %v1165_v16  ;;  %v1168_v25 = vpop.f32.mrb[58].mxu1 }
 0x27c   :  { %v1169_v30 = vpop.f32.mrb[59].mxu1 }
 0x27d   :  { %v952_v31 = vadd.f32 %v1167_v18, %v1568_v38  ;;  %v1170_v32 = vadd.f32 %v1169_v30, %v1168_v25 }
 0x27f   :  { %978 = vst [vmem:[#allocation8 + $0xe0] sm:$0xff] %v952_v31  ;;  %v955_v33 = vadd.f32 %v1170_v32, %v1568_v38 }
 0x281   :  { %979 = vst [vmem:[#allocation8 + $0xe8] sm:$0xff] %v955_v33  ;;  %v1171_v34 = vpop.f32.mrb[60].mxu1 }
 0x282   :  { %v1172_v19 = vpop.f32.mrb[61].mxu1 }
 0x283   :  { %v1173_v35 = vadd.f32 %v1172_v19, %v1171_v34  ;;  %v1174_v20 = vpop.f32.mrb[62].mxu1 }
 0x284   :  { %v1175_v36 = vpop.f32.mrb[63].mxu1 }
 0x285   :  { %v960_v37 = vadd.f32 %v1173_v35, %v1568_v38  ;;  %v1176_v21 = vadd.f32 %v1175_v36, %v1174_v20 }
 0x287   :  { %980 = vst [vmem:[#allocation8 + $0xf0] sm:$0xff] %v960_v37  ;;  %v963_v40 = vadd.f32 %v1176_v21, %v1568_v38 }
 0x289   :  { %981 = vst [vmem:[#allocation8 + $0xf8] sm:$0xff] %v963_v40 }
 0x28a   :  { %1319 = shalt.err (!%p1316_p0)
}
 0x28b   :  { %s1320_s14 = scalar_lea.hbm %s1622_s5, 4096 }
 0x28c   :  { %p1321_p1 = scmp.ne.s32.totalorder %s1622_s5, %s1320_s14  ;;  %p1324_p2 = scmp.lt.u32.totalorder %s1320_s14, %s1622_s5 }
 0x28e   :  { %p1326_p3 = pnand %p1324_p2, %p1321_p1 }
 0x290   :  { %1329 = shalt.err (!%p1326_p3)
}
 0x291   :  { %993 = dma.vmem_to_hbm [thread:$0]  %s988_s10, 4096, %s1622_s5, [#allocation4], %s1337_s28, %s1337_s28, %s1338_s29  }
 0x292   :  { %1334 = dma.done.wait [#allocation4], 4096  }
 0x293   :  { %1335 = vsyncadd [#allocation4], 4294963200 }
 0x294   :  { %997 = vsyncpa [#allocation3], 1 }
 0x295   :  { %998 = vsyncpa [#allocation6], 1 }
 0x296   :  { %999 = vsyncpa [#allocation4], 1 }

</bundles_post_ra>
